<compile_context>
chip_gen: v7x
topology: tpu7x:2x2x1
jax: 0.10.0
libtpu: 0.0.40
codegen_flags: <defaults>
</compile_context>

<pallas_src>
import jax
import jax.numpy as jnp
import numpy as np
from jax.experimental import pallas as pl
from jax.experimental.pallas import tpu as pltpu

# --- problem sizes (small, consistent with a tiny transformer) --------------
B = 2          # batch
T = 8          # sequence length
D = 32         # hidden size
H = 2          # attention heads
DH = D // H    # per-head dim
DFF = 4 * D    # MLP hidden
EPS = 1e-5
BT = B * T


def _layernorm(x, gamma, beta):
    mu = jnp.mean(x, axis=-1, keepdims=True)
    var = jnp.mean((x - mu) ** 2, axis=-1, keepdims=True)
    return (x - mu) * jax.lax.rsqrt(var + EPS) * gamma + beta


def _block_kernel(x_ref,
                  g1_ref, be1_ref,
                  wq_ref, bq_ref, wk_ref, bk_ref, wv_ref, bv_ref,
                  wo_ref, bo_ref,
                  g2_ref, be2_ref,
                  w1_ref, b1_ref, w2_ref, b2_ref,
                  o_ref):
    f32 = jnp.float32
    bf16 = jnp.bfloat16

    x = x_ref[...]                                          # (BT, D) f32

    # ---- pre-LN #1 (f32 elementwise) ----
    h1 = _layernorm(x, g1_ref[...], be1_ref[...])           # (BT, D)
    h1b = h1.astype(bf16)

    # ---- per-head Q/K/V projections over the whole flattened batch ----
    # (weights are per-head (D, DH) tiles prepared in the wrapper; Q weights
    #  already carry the 1/sqrt(DH) scale)
    q_heads, k_heads, v_heads = [], [], []
    for hd in range(H):                                     # static, H = 2
        q_heads.append(jnp.dot(h1b, wq_ref[hd],
                               preferred_element_type=f32) + bq_ref[hd])
        k_heads.append(jnp.dot(h1b, wk_ref[hd],
                               preferred_element_type=f32) + bk_ref[hd])
        v_heads.append(jnp.dot(h1b, wv_ref[hd],
                               preferred_element_type=f32) + bv_ref[hd])

    # ---- scaled dot-product attention per (batch, head) ----
    # Batch rows are separated by aligned sublane slices (multiples of 8);
    # per-head outputs are accumulated directly through the output projection
    # (no lane-axis slicing, no lane-axis concatenation).
    attn_rows = []
    for b in range(B):                                      # static, B = 2
        lo, hi = b * T, (b + 1) * T
        acc = None
        for hd in range(H):
            qb = q_heads[hd][lo:hi].astype(bf16)            # (T, DH)
            kb = k_heads[hd][lo:hi].astype(bf16)            # (T, DH)
            vb = v_heads[hd][lo:hi].astype(bf16)            # (T, DH)
            s = jnp.einsum('td,sd->ts', qb, kb,
                           preferred_element_type=f32)      # (T, T)
            s = s - jnp.max(s, axis=-1, keepdims=True)
            p = jnp.exp(s)
            p = p * pl.reciprocal(jnp.sum(p, axis=-1, keepdims=True),
                                  approx=True)
            oh = jnp.dot(p.astype(bf16), vb,
                         preferred_element_type=f32)        # (T, DH)
            contrib = jnp.dot(oh.astype(bf16), wo_ref[hd],
                              preferred_element_type=f32)   # (T, D)
            acc = contrib if acc is None else acc + contrib
        attn_rows.append(acc)
    attn = jnp.concatenate(attn_rows, axis=0)               # (BT, D)

    # residual #1 with the out-proj bias folded into a single epilogue add
    y = x + attn + bo_ref[...]

    # ---- pre-LN #2 + GELU MLP ----
    h2 = _layernorm(y, g2_ref[...], be2_ref[...])
    m = jnp.dot(h2.astype(bf16), w1_ref[...],
                preferred_element_type=f32) + b1_ref[...]   # (BT, DFF)
    m = jax.nn.gelu(m, approximate=True)                    # f32 on VPU/EUP
    m = jnp.dot(m.astype(bf16), w2_ref[...],
                preferred_element_type=f32) + b2_ref[...]   # (BT, D)

    o_ref[...] = (y + m).astype(o_ref.dtype)


@jax.jit
def transformer_block(x, params):
    (g1, be1, wqkv, bqkv, wo, bo, g2, be2, w1, b1, w2, b2) = params
    bf16 = jnp.bfloat16
    scale = jnp.float32(1.0 / np.sqrt(DH))

    # ---- wrapper-side layout plumbing (free: plain XLA ops) ----
    # Split the fused in_proj into per-head weight tiles so the kernel never
    # slices activations along the lane axis.
    wq = wqkv[:, 0 * D:1 * D].reshape(D, H, DH).transpose(1, 0, 2)  # (H, D, DH)
    wk = wqkv[:, 1 * D:2 * D].reshape(D, H, DH).transpose(1, 0, 2)
    wv = wqkv[:, 2 * D:3 * D].reshape(D, H, DH).transpose(1, 0, 2)
    bq = bqkv[:, 0 * D:1 * D].reshape(1, H, DH).transpose(1, 0, 2)  # (H, 1, DH)
    bk = bqkv[:, 1 * D:2 * D].reshape(1, H, DH).transpose(1, 0, 2)
    bv = bqkv[:, 2 * D:3 * D].reshape(1, H, DH).transpose(1, 0, 2)
    wo_h = wo.reshape(H, DH, D)                                     # (H, DH, D)

    # fold the attention scale into the Q projection (zero in-kernel cost)
    wq = wq * scale
    bq = bq * scale

    # collapse the batch grid: one lane-contiguous (B*T, D) slab, one kernel call
    x2d = x.reshape(BT, D)

    out2d = pl.pallas_call(
        _block_kernel,
        out_shape=jax.ShapeDtypeStruct((BT, D), jnp.float32),
        # no grid: whole problem in one invocation, every array resident in
        # VMEM as a single full block (~60 KiB total), weights DMA'd once.
    )(x2d,
      g1, be1,
      wq.astype(bf16), bq, wk.astype(bf16), bk, wv.astype(bf16), bv,
      wo_h.astype(bf16), bo,
      g2, be2,
      w1.astype(bf16), b1, w2.astype(bf16), b2)

    return out2d.reshape(B, T, D)


def reference(x, params):
    # pure-f32 reference with the module's original fused-QKV layout
    (g1, be1, wqkv, bqkv, wo, bo, g2, be2, w1, b1, w2, b2) = params

    def one(xb):
        h = _layernorm(xb, g1[0], be1[0])
        qkv = h @ wqkv + bqkv[0]
        q, k, v = qkv[:, :D], qkv[:, D:2 * D], qkv[:, 2 * D:]
        outs = []
        for hd in range(H):
            qh = q[:, hd * DH:(hd + 1) * DH]
            kh = k[:, hd * DH:(hd + 1) * DH]
            vh = v[:, hd * DH:(hd + 1) * DH]
            s = (qh @ kh.T) / jnp.sqrt(jnp.float32(DH))
            p = jax.nn.softmax(s, axis=-1)
            outs.append(p @ vh)
        attn = jnp.concatenate(outs, axis=-1) @ wo + bo[0]
        y = xb + attn
        h2 = _layernorm(y, g2[0], be2[0])
        m = jax.nn.gelu(h2 @ w1 + b1[0], approximate=True) @ w2 + b2[0]
        return y + m

    return jax.vmap(one)(x)


def init_params(key):
    ks = jax.random.split(key, 8)
    s = 0.02
    g1 = jnp.ones((1, D), jnp.float32)
    be1 = jnp.zeros((1, D), jnp.float32)
    wqkv = s * jax.random.normal(ks[0], (D, 3 * D), jnp.float32)
    bqkv = jnp.zeros((1, 3 * D), jnp.float32)
    wo = s * jax.random.normal(ks[1], (D, D), jnp.float32)
    bo = jnp.zeros((1, D), jnp.float32)
    g2 = jnp.ones((1, D), jnp.float32)
    be2 = jnp.zeros((1, D), jnp.float32)
    w1 = s * jax.random.normal(ks[2], (D, DFF), jnp.float32)
    b1 = jnp.zeros((1, DFF), jnp.float32)
    w2 = s * jax.random.normal(ks[3], (DFF, D), jnp.float32)
    b2 = jnp.zeros((1, D), jnp.float32)
    return (g1, be1, wqkv, bqkv, wo, bo, g2, be2, w1, b1, w2, b2)


if __name__ == "__main__":
    key = jax.random.PRNGKey(0)
    kx, kp = jax.random.split(key)
    x = jax.random.normal(kx, (B, T, D), jnp.float32)
    params = init_params(kp)

    out = jax.block_until_ready(transformer_block(x, params))
    ref = jax.block_until_ready(reference(x, params))

    # bf16 matmul operands (f32 accumulation) + approx softmax reciprocal:
    # loosen tolerance from 1e-4 to 2e-3 (error budget ≲ 5e-4 at these sizes).
    np.testing.assert_allclose(np.asarray(out), np.asarray(ref),
                               rtol=2e-3, atol=2e-3)
    assert out.shape == (B, T, D)
    print("KERNEL_OK")
</pallas_src>

<mosaic_0001>
module attributes {stable_mosaic.version = 11 : i64} {
  func.func @_block_kernel(%arg0: memref<16x32xf32, #tpu.memory_space<vmem>>, %arg1: memref<1x32xf32, #tpu.memory_space<vmem>>, %arg2: memref<1x32xf32, #tpu.memory_space<vmem>>, %arg3: memref<2x32x16xbf16, #tpu.memory_space<vmem>>, %arg4: memref<2x1x16xf32, #tpu.memory_space<vmem>>, %arg5: memref<2x32x16xbf16, #tpu.memory_space<vmem>>, %arg6: memref<2x1x16xf32, #tpu.memory_space<vmem>>, %arg7: memref<2x32x16xbf16, #tpu.memory_space<vmem>>, %arg8: memref<2x1x16xf32, #tpu.memory_space<vmem>>, %arg9: memref<2x16x32xbf16, #tpu.memory_space<vmem>>, %arg10: memref<1x32xf32, #tpu.memory_space<vmem>>, %arg11: memref<1x32xf32, #tpu.memory_space<vmem>>, %arg12: memref<1x32xf32, #tpu.memory_space<vmem>>, %arg13: memref<32x128xbf16, #tpu.memory_space<vmem>>, %arg14: memref<1x128xf32, #tpu.memory_space<vmem>>, %arg15: memref<128x32xbf16, #tpu.memory_space<vmem>>, %arg16: memref<1x32xf32, #tpu.memory_space<vmem>>, %arg17: memref<16x32xf32, #tpu.memory_space<vmem>>) attributes {dimension_semantics = [], scalar_prefetch = 0 : i64, scratch_operands = 0 : i64, tpu.core_type = #tpu.core_type<tc>} {
    %c0 = arith.constant 0 : index
    %c0_0 = arith.constant 0 : index
    %0 = vector.load %arg0[%c0, %c0_0] : memref<16x32xf32, #tpu.memory_space<vmem>>, vector<16x32xf32>
    %c0_1 = arith.constant 0 : index
    %c0_2 = arith.constant 0 : index
    %1 = vector.load %arg1[%c0_1, %c0_2] : memref<1x32xf32, #tpu.memory_space<vmem>>, vector<1x32xf32>
    %c0_3 = arith.constant 0 : index
    %c0_4 = arith.constant 0 : index
    %2 = vector.load %arg2[%c0_3, %c0_4] : memref<1x32xf32, #tpu.memory_space<vmem>>, vector<1x32xf32>
    %cst = arith.constant dense<0.000000e+00> : vector<16xf32>
    %3 = vector.multi_reduction <add>, %0, %cst [1] : vector<16x32xf32> to vector<16xf32>
    %4 = vector.shape_cast %3 : vector<16xf32> to vector<16x1xf32>
    %cst_5 = arith.constant 3.200000e+01 : f32
    %5 = vector.broadcast %cst_5 : f32 to vector<16x1xf32>
    %6 = arith.divf %4, %5 : vector<16x1xf32>
    %7 = vector.broadcast %6 : vector<16x1xf32> to vector<16x32xf32>
    %8 = arith.subf %0, %7 : vector<16x32xf32>
    %9 = arith.mulf %8, %8 : vector<16x32xf32>
    %cst_6 = arith.constant dense<0.000000e+00> : vector<16xf32>
    %10 = vector.multi_reduction <add>, %9, %cst_6 [1] : vector<16x32xf32> to vector<16xf32>
    %11 = vector.shape_cast %10 : vector<16xf32> to vector<16x1xf32>
    %cst_7 = arith.constant 3.200000e+01 : f32
    %12 = vector.broadcast %cst_7 : f32 to vector<16x1xf32>
    %13 = arith.divf %11, %12 : vector<16x1xf32>
    %14 = vector.broadcast %6 : vector<16x1xf32> to vector<16x32xf32>
    %15 = arith.subf %0, %14 : vector<16x32xf32>
    %cst_8 = arith.constant 9.99999974E-6 : f32
    %16 = vector.broadcast %cst_8 : f32 to vector<16x1xf32>
    %17 = arith.addf %13, %16 : vector<16x1xf32>
    %18 = math.rsqrt %17 : vector<16x1xf32>
    %19 = vector.broadcast %18 : vector<16x1xf32> to vector<16x32xf32>
    %20 = arith.mulf %15, %19 : vector<16x32xf32>
    %21 = vector.broadcast %1 : vector<1x32xf32> to vector<16x32xf32>
    %22 = arith.mulf %20, %21 : vector<16x32xf32>
    %23 = vector.broadcast %2 : vector<1x32xf32> to vector<16x32xf32>
    %24 = arith.addf %22, %23 : vector<16x32xf32>
    %25 = arith.truncf %24 : vector<16x32xf32> to vector<16x32xbf16>
    %c0_9 = arith.constant 0 : index
    %c0_10 = arith.constant 0 : index
    %c0_11 = arith.constant 0 : index
    %26 = vector.load %arg3[%c0_9, %c0_10, %c0_11] : memref<2x32x16xbf16, #tpu.memory_space<vmem>>, vector<1x32x16xbf16>
    %27 = vector.shape_cast %26 : vector<1x32x16xbf16> to vector<32x16xbf16>
    %cst_12 = arith.constant dense<0.000000e+00> : vector<16x16xf32>
    %28 = tpu.matmul %25, %27, %cst_12 {dimension_numbers = #tpu.dot_dimension_numbers<[1], [0], [0], [1], [0, 0, 1, 1], [], []>} : vector<16x32xbf16>, vector<32x16xbf16>, vector<16x16xf32> -> vector<16x16xf32>
    %c0_13 = arith.constant 0 : index
    %c0_14 = arith.constant 0 : index
    %c0_15 = arith.constant 0 : index
    %29 = vector.load %arg4[%c0_13, %c0_14, %c0_15] : memref<2x1x16xf32, #tpu.memory_space<vmem>>, vector<1x1x16xf32>
    %30 = vector.shape_cast %29 : vector<1x1x16xf32> to vector<1x16xf32>
    %31 = vector.broadcast %30 : vector<1x16xf32> to vector<16x16xf32>
    %32 = arith.addf %28, %31 : vector<16x16xf32>
    %c0_16 = arith.constant 0 : index
    %c0_17 = arith.constant 0 : index
    %c0_18 = arith.constant 0 : index
    %33 = vector.load %arg5[%c0_16, %c0_17, %c0_18] : memref<2x32x16xbf16, #tpu.memory_space<vmem>>, vector<1x32x16xbf16>
    %34 = vector.shape_cast %33 : vector<1x32x16xbf16> to vector<32x16xbf16>
    %cst_19 = arith.constant dense<0.000000e+00> : vector<16x16xf32>
    %35 = tpu.matmul %25, %34, %cst_19 {dimension_numbers = #tpu.dot_dimension_numbers<[1], [0], [0], [1], [0, 0, 1, 1], [], []>} : vector<16x32xbf16>, vector<32x16xbf16>, vector<16x16xf32> -> vector<16x16xf32>
    %c0_20 = arith.constant 0 : index
    %c0_21 = arith.constant 0 : index
    %c0_22 = arith.constant 0 : index
    %36 = vector.load %arg6[%c0_20, %c0_21, %c0_22] : memref<2x1x16xf32, #tpu.memory_space<vmem>>, vector<1x1x16xf32>
    %37 = vector.shape_cast %36 : vector<1x1x16xf32> to vector<1x16xf32>
    %38 = vector.broadcast %37 : vector<1x16xf32> to vector<16x16xf32>
    %39 = arith.addf %35, %38 : vector<16x16xf32>
    %c0_23 = arith.constant 0 : index
    %c0_24 = arith.constant 0 : index
    %c0_25 = arith.constant 0 : index
    %40 = vector.load %arg7[%c0_23, %c0_24, %c0_25] : memref<2x32x16xbf16, #tpu.memory_space<vmem>>, vector<1x32x16xbf16>
    %41 = vector.shape_cast %40 : vector<1x32x16xbf16> to vector<32x16xbf16>
    %cst_26 = arith.constant dense<0.000000e+00> : vector<16x16xf32>
    %42 = tpu.matmul %25, %41, %cst_26 {dimension_numbers = #tpu.dot_dimension_numbers<[1], [0], [0], [1], [0, 0, 1, 1], [], []>} : vector<16x32xbf16>, vector<32x16xbf16>, vector<16x16xf32> -> vector<16x16xf32>
    %c0_27 = arith.constant 0 : index
    %c0_28 = arith.constant 0 : index
    %c0_29 = arith.constant 0 : index
    %43 = vector.load %arg8[%c0_27, %c0_28, %c0_29] : memref<2x1x16xf32, #tpu.memory_space<vmem>>, vector<1x1x16xf32>
    %44 = vector.shape_cast %43 : vector<1x1x16xf32> to vector<1x16xf32>
    %45 = vector.broadcast %44 : vector<1x16xf32> to vector<16x16xf32>
    %46 = arith.addf %42, %45 : vector<16x16xf32>
    %c1 = arith.constant 1 : index
    %c0_30 = arith.constant 0 : index
    %c0_31 = arith.constant 0 : index
    %47 = vector.load %arg3[%c1, %c0_30, %c0_31] : memref<2x32x16xbf16, #tpu.memory_space<vmem>>, vector<1x32x16xbf16>
    %48 = vector.shape_cast %47 : vector<1x32x16xbf16> to vector<32x16xbf16>
    %cst_32 = arith.constant dense<0.000000e+00> : vector<16x16xf32>
    %49 = tpu.matmul %25, %48, %cst_32 {dimension_numbers = #tpu.dot_dimension_numbers<[1], [0], [0], [1], [0, 0, 1, 1], [], []>} : vector<16x32xbf16>, vector<32x16xbf16>, vector<16x16xf32> -> vector<16x16xf32>
    %c1_33 = arith.constant 1 : index
    %c0_34 = arith.constant 0 : index
    %c0_35 = arith.constant 0 : index
    %50 = vector.load %arg4[%c1_33, %c0_34, %c0_35] : memref<2x1x16xf32, #tpu.memory_space<vmem>>, vector<1x1x16xf32>
    %51 = vector.shape_cast %50 : vector<1x1x16xf32> to vector<1x16xf32>
    %52 = vector.broadcast %51 : vector<1x16xf32> to vector<16x16xf32>
    %53 = arith.addf %49, %52 : vector<16x16xf32>
    %c1_36 = arith.constant 1 : index
    %c0_37 = arith.constant 0 : index
    %c0_38 = arith.constant 0 : index
    %54 = vector.load %arg5[%c1_36, %c0_37, %c0_38] : memref<2x32x16xbf16, #tpu.memory_space<vmem>>, vector<1x32x16xbf16>
    %55 = vector.shape_cast %54 : vector<1x32x16xbf16> to vector<32x16xbf16>
    %cst_39 = arith.constant dense<0.000000e+00> : vector<16x16xf32>
    %56 = tpu.matmul %25, %55, %cst_39 {dimension_numbers = #tpu.dot_dimension_numbers<[1], [0], [0], [1], [0, 0, 1, 1], [], []>} : vector<16x32xbf16>, vector<32x16xbf16>, vector<16x16xf32> -> vector<16x16xf32>
    %c1_40 = arith.constant 1 : index
    %c0_41 = arith.constant 0 : index
    %c0_42 = arith.constant 0 : index
    %57 = vector.load %arg6[%c1_40, %c0_41, %c0_42] : memref<2x1x16xf32, #tpu.memory_space<vmem>>, vector<1x1x16xf32>
    %58 = vector.shape_cast %57 : vector<1x1x16xf32> to vector<1x16xf32>
    %59 = vector.broadcast %58 : vector<1x16xf32> to vector<16x16xf32>
    %60 = arith.addf %56, %59 : vector<16x16xf32>
    %c1_43 = arith.constant 1 : index
    %c0_44 = arith.constant 0 : index
    %c0_45 = arith.constant 0 : index
    %61 = vector.load %arg7[%c1_43, %c0_44, %c0_45] : memref<2x32x16xbf16, #tpu.memory_space<vmem>>, vector<1x32x16xbf16>
    %62 = vector.shape_cast %61 : vector<1x32x16xbf16> to vector<32x16xbf16>
    %cst_46 = arith.constant dense<0.000000e+00> : vector<16x16xf32>
    %63 = tpu.matmul %25, %62, %cst_46 {dimension_numbers = #tpu.dot_dimension_numbers<[1], [0], [0], [1], [0, 0, 1, 1], [], []>} : vector<16x32xbf16>, vector<32x16xbf16>, vector<16x16xf32> -> vector<16x16xf32>
    %c1_47 = arith.constant 1 : index
    %c0_48 = arith.constant 0 : index
    %c0_49 = arith.constant 0 : index
    %64 = vector.load %arg8[%c1_47, %c0_48, %c0_49] : memref<2x1x16xf32, #tpu.memory_space<vmem>>, vector<1x1x16xf32>
    %65 = vector.shape_cast %64 : vector<1x1x16xf32> to vector<1x16xf32>
    %66 = vector.broadcast %65 : vector<1x16xf32> to vector<16x16xf32>
    %67 = arith.addf %63, %66 : vector<16x16xf32>
    %68 = vector.extract_strided_slice %32 {offsets = [0, 0], sizes = [8, 16], strides = [1, 1]} : vector<16x16xf32> to vector<8x16xf32>
    %69 = arith.truncf %68 : vector<8x16xf32> to vector<8x16xbf16>
    %70 = vector.extract_strided_slice %39 {offsets = [0, 0], sizes = [8, 16], strides = [1, 1]} : vector<16x16xf32> to vector<8x16xf32>
    %71 = arith.truncf %70 : vector<8x16xf32> to vector<8x16xbf16>
    %72 = vector.extract_strided_slice %46 {offsets = [0, 0], sizes = [8, 16], strides = [1, 1]} : vector<16x16xf32> to vector<8x16xf32>
    %73 = arith.truncf %72 : vector<8x16xf32> to vector<8x16xbf16>
    "tpu.trace_start"() <{level = 10 : i32, message = "td,sd->ts"}> : () -> ()
    %cst_50 = arith.constant dense<0.000000e+00> : vector<8x8xf32>
    %74 = tpu.matmul %69, %71, %cst_50 {dimension_numbers = #tpu.dot_dimension_numbers<[1], [1], [0], [0], [0, 0, 1, 0], [], []>} : vector<8x16xbf16>, vector<8x16xbf16>, vector<8x8xf32> -> vector<8x8xf32>
    "tpu.trace_stop"() : () -> ()
    %cst_51 = arith.constant dense<0xFF800000> : vector<8xf32>
    %75 = vector.multi_reduction <maximumf>, %74, %cst_51 [1] : vector<8x8xf32> to vector<8xf32>
    %76 = vector.shape_cast %75 : vector<8xf32> to vector<8x1xf32>
    %77 = vector.broadcast %76 : vector<8x1xf32> to vector<8x8xf32>
    %78 = arith.subf %74, %77 : vector<8x8xf32>
    %79 = math.exp %78 : vector<8x8xf32>
    %cst_52 = arith.constant dense<0.000000e+00> : vector<8xf32>
    %80 = vector.multi_reduction <add>, %79, %cst_52 [1] : vector<8x8xf32> to vector<8xf32>
    %81 = vector.shape_cast %80 : vector<8xf32> to vector<8x1xf32>
    %82 = tpu.reciprocal %81 {approx = true} : vector<8x1xf32> -> vector<8x1xf32>
    %83 = vector.broadcast %82 : vector<8x1xf32> to vector<8x8xf32>
    %84 = arith.mulf %79, %83 : vector<8x8xf32>
    %85 = arith.truncf %84 : vector<8x8xf32> to vector<8x8xbf16>
    %cst_53 = arith.constant dense<0.000000e+00> : vector<8x16xf32>
    %86 = tpu.matmul %85, %73, %cst_53 {dimension_numbers = #tpu.dot_dimension_numbers<[1], [0], [0], [1], [0, 0, 1, 1], [], []>} : vector<8x8xbf16>, vector<8x16xbf16>, vector<8x16xf32> -> vector<8x16xf32>
    %87 = arith.truncf %86 : vector<8x16xf32> to vector<8x16xbf16>
    %c0_54 = arith.constant 0 : index
    %c0_55 = arith.constant 0 : index
    %c0_56 = arith.constant 0 : index
    %88 = vector.load %arg9[%c0_54, %c0_55, %c0_56] : memref<2x16x32xbf16, #tpu.memory_space<vmem>>, vector<1x16x32xbf16>
    %89 = vector.shape_cast %88 : vector<1x16x32xbf16> to vector<16x32xbf16>
    %cst_57 = arith.constant dense<0.000000e+00> : vector<8x32xf32>
    %90 = tpu.matmul %87, %89, %cst_57 {dimension_numbers = #tpu.dot_dimension_numbers<[1], [0], [0], [1], [0, 0, 1, 1], [], []>} : vector<8x16xbf16>, vector<16x32xbf16>, vector<8x32xf32> -> vector<8x32xf32>
    %91 = vector.extract_strided_slice %53 {offsets = [0, 0], sizes = [8, 16], strides = [1, 1]} : vector<16x16xf32> to vector<8x16xf32>
    %92 = arith.truncf %91 : vector<8x16xf32> to vector<8x16xbf16>
    %93 = vector.extract_strided_slice %60 {offsets = [0, 0], sizes = [8, 16], strides = [1, 1]} : vector<16x16xf32> to vector<8x16xf32>
    %94 = arith.truncf %93 : vector<8x16xf32> to vector<8x16xbf16>
    %95 = vector.extract_strided_slice %67 {offsets = [0, 0], sizes = [8, 16], strides = [1, 1]} : vector<16x16xf32> to vector<8x16xf32>
    %96 = arith.truncf %95 : vector<8x16xf32> to vector<8x16xbf16>
    "tpu.trace_start"() <{level = 10 : i32, message = "td,sd->ts"}> : () -> ()
    %cst_58 = arith.constant dense<0.000000e+00> : vector<8x8xf32>
    %97 = tpu.matmul %92, %94, %cst_58 {dimension_numbers = #tpu.dot_dimension_numbers<[1], [1], [0], [0], [0, 0, 1, 0], [], []>} : vector<8x16xbf16>, vector<8x16xbf16>, vector<8x8xf32> -> vector<8x8xf32>
    "tpu.trace_stop"() : () -> ()
    %cst_59 = arith.constant dense<0xFF800000> : vector<8xf32>
    %98 = vector.multi_reduction <maximumf>, %97, %cst_59 [1] : vector<8x8xf32> to vector<8xf32>
    %99 = vector.shape_cast %98 : vector<8xf32> to vector<8x1xf32>
    %100 = vector.broadcast %99 : vector<8x1xf32> to vector<8x8xf32>
    %101 = arith.subf %97, %100 : vector<8x8xf32>
    %102 = math.exp %101 : vector<8x8xf32>
    %cst_60 = arith.constant dense<0.000000e+00> : vector<8xf32>
    %103 = vector.multi_reduction <add>, %102, %cst_60 [1] : vector<8x8xf32> to vector<8xf32>
    %104 = vector.shape_cast %103 : vector<8xf32> to vector<8x1xf32>
    %105 = tpu.reciprocal %104 {approx = true} : vector<8x1xf32> -> vector<8x1xf32>
    %106 = vector.broadcast %105 : vector<8x1xf32> to vector<8x8xf32>
    %107 = arith.mulf %102, %106 : vector<8x8xf32>
    %108 = arith.truncf %107 : vector<8x8xf32> to vector<8x8xbf16>
    %cst_61 = arith.constant dense<0.000000e+00> : vector<8x16xf32>
    %109 = tpu.matmul %108, %96, %cst_61 {dimension_numbers = #tpu.dot_dimension_numbers<[1], [0], [0], [1], [0, 0, 1, 1], [], []>} : vector<8x8xbf16>, vector<8x16xbf16>, vector<8x16xf32> -> vector<8x16xf32>
    %110 = arith.truncf %109 : vector<8x16xf32> to vector<8x16xbf16>
    %c1_62 = arith.constant 1 : index
    %c0_63 = arith.constant 0 : index
    %c0_64 = arith.constant 0 : index
    %111 = vector.load %arg9[%c1_62, %c0_63, %c0_64] : memref<2x16x32xbf16, #tpu.memory_space<vmem>>, vector<1x16x32xbf16>
    %112 = vector.shape_cast %111 : vector<1x16x32xbf16> to vector<16x32xbf16>
    %cst_65 = arith.constant dense<0.000000e+00> : vector<8x32xf32>
    %113 = tpu.matmul %110, %112, %cst_65 {dimension_numbers = #tpu.dot_dimension_numbers<[1], [0], [0], [1], [0, 0, 1, 1], [], []>} : vector<8x16xbf16>, vector<16x32xbf16>, vector<8x32xf32> -> vector<8x32xf32>
    %114 = arith.addf %90, %113 : vector<8x32xf32>
    %115 = vector.extract_strided_slice %32 {offsets = [8, 0], sizes = [8, 16], strides = [1, 1]} : vector<16x16xf32> to vector<8x16xf32>
    %116 = arith.truncf %115 : vector<8x16xf32> to vector<8x16xbf16>
    %117 = vector.extract_strided_slice %39 {offsets = [8, 0], sizes = [8, 16], strides = [1, 1]} : vector<16x16xf32> to vector<8x16xf32>
    %118 = arith.truncf %117 : vector<8x16xf32> to vector<8x16xbf16>
    %119 = vector.extract_strided_slice %46 {offsets = [8, 0], sizes = [8, 16], strides = [1, 1]} : vector<16x16xf32> to vector<8x16xf32>
    %120 = arith.truncf %119 : vector<8x16xf32> to vector<8x16xbf16>
    "tpu.trace_start"() <{level = 10 : i32, message = "td,sd->ts"}> : () -> ()
    %cst_66 = arith.constant dense<0.000000e+00> : vector<8x8xf32>
    %121 = tpu.matmul %116, %118, %cst_66 {dimension_numbers = #tpu.dot_dimension_numbers<[1], [1], [0], [0], [0, 0, 1, 0], [], []>} : vector<8x16xbf16>, vector<8x16xbf16>, vector<8x8xf32> -> vector<8x8xf32>
    "tpu.trace_stop"() : () -> ()
    %cst_67 = arith.constant dense<0xFF800000> : vector<8xf32>
    %122 = vector.multi_reduction <maximumf>, %121, %cst_67 [1] : vector<8x8xf32> to vector<8xf32>
    %123 = vector.shape_cast %122 : vector<8xf32> to vector<8x1xf32>
    %124 = vector.broadcast %123 : vector<8x1xf32> to vector<8x8xf32>
    %125 = arith.subf %121, %124 : vector<8x8xf32>
    %126 = math.exp %125 : vector<8x8xf32>
    %cst_68 = arith.constant dense<0.000000e+00> : vector<8xf32>
    %127 = vector.multi_reduction <add>, %126, %cst_68 [1] : vector<8x8xf32> to vector<8xf32>
    %128 = vector.shape_cast %127 : vector<8xf32> to vector<8x1xf32>
    %129 = tpu.reciprocal %128 {approx = true} : vector<8x1xf32> -> vector<8x1xf32>
    %130 = vector.broadcast %129 : vector<8x1xf32> to vector<8x8xf32>
    %131 = arith.mulf %126, %130 : vector<8x8xf32>
    %132 = arith.truncf %131 : vector<8x8xf32> to vector<8x8xbf16>
    %cst_69 = arith.constant dense<0.000000e+00> : vector<8x16xf32>
    %133 = tpu.matmul %132, %120, %cst_69 {dimension_numbers = #tpu.dot_dimension_numbers<[1], [0], [0], [1], [0, 0, 1, 1], [], []>} : vector<8x8xbf16>, vector<8x16xbf16>, vector<8x16xf32> -> vector<8x16xf32>
    %134 = arith.truncf %133 : vector<8x16xf32> to vector<8x16xbf16>
    %c0_70 = arith.constant 0 : index
    %c0_71 = arith.constant 0 : index
    %c0_72 = arith.constant 0 : index
    %135 = vector.load %arg9[%c0_70, %c0_71, %c0_72] : memref<2x16x32xbf16, #tpu.memory_space<vmem>>, vector<1x16x32xbf16>
    %136 = vector.shape_cast %135 : vector<1x16x32xbf16> to vector<16x32xbf16>
    %cst_73 = arith.constant dense<0.000000e+00> : vector<8x32xf32>
    %137 = tpu.matmul %134, %136, %cst_73 {dimension_numbers = #tpu.dot_dimension_numbers<[1], [0], [0], [1], [0, 0, 1, 1], [], []>} : vector<8x16xbf16>, vector<16x32xbf16>, vector<8x32xf32> -> vector<8x32xf32>
    %138 = vector.extract_strided_slice %53 {offsets = [8, 0], sizes = [8, 16], strides = [1, 1]} : vector<16x16xf32> to vector<8x16xf32>
    %139 = arith.truncf %138 : vector<8x16xf32> to vector<8x16xbf16>
    %140 = vector.extract_strided_slice %60 {offsets = [8, 0], sizes = [8, 16], strides = [1, 1]} : vector<16x16xf32> to vector<8x16xf32>
    %141 = arith.truncf %140 : vector<8x16xf32> to vector<8x16xbf16>
    %142 = vector.extract_strided_slice %67 {offsets = [8, 0], sizes = [8, 16], strides = [1, 1]} : vector<16x16xf32> to vector<8x16xf32>
    %143 = arith.truncf %142 : vector<8x16xf32> to vector<8x16xbf16>
    "tpu.trace_start"() <{level = 10 : i32, message = "td,sd->ts"}> : () -> ()
    %cst_74 = arith.constant dense<0.000000e+00> : vector<8x8xf32>
    %144 = tpu.matmul %139, %141, %cst_74 {dimension_numbers = #tpu.dot_dimension_numbers<[1], [1], [0], [0], [0, 0, 1, 0], [], []>} : vector<8x16xbf16>, vector<8x16xbf16>, vector<8x8xf32> -> vector<8x8xf32>
    "tpu.trace_stop"() : () -> ()
    %cst_75 = arith.constant dense<0xFF800000> : vector<8xf32>
    %145 = vector.multi_reduction <maximumf>, %144, %cst_75 [1] : vector<8x8xf32> to vector<8xf32>
    %146 = vector.shape_cast %145 : vector<8xf32> to vector<8x1xf32>
    %147 = vector.broadcast %146 : vector<8x1xf32> to vector<8x8xf32>
    %148 = arith.subf %144, %147 : vector<8x8xf32>
    %149 = math.exp %148 : vector<8x8xf32>
    %cst_76 = arith.constant dense<0.000000e+00> : vector<8xf32>
    %150 = vector.multi_reduction <add>, %149, %cst_76 [1] : vector<8x8xf32> to vector<8xf32>
    %151 = vector.shape_cast %150 : vector<8xf32> to vector<8x1xf32>
    %152 = tpu.reciprocal %151 {approx = true} : vector<8x1xf32> -> vector<8x1xf32>
    %153 = vector.broadcast %152 : vector<8x1xf32> to vector<8x8xf32>
    %154 = arith.mulf %149, %153 : vector<8x8xf32>
    %155 = arith.truncf %154 : vector<8x8xf32> to vector<8x8xbf16>
    %cst_77 = arith.constant dense<0.000000e+00> : vector<8x16xf32>
    %156 = tpu.matmul %155, %143, %cst_77 {dimension_numbers = #tpu.dot_dimension_numbers<[1], [0], [0], [1], [0, 0, 1, 1], [], []>} : vector<8x8xbf16>, vector<8x16xbf16>, vector<8x16xf32> -> vector<8x16xf32>
    %157 = arith.truncf %156 : vector<8x16xf32> to vector<8x16xbf16>
    %c1_78 = arith.constant 1 : index
    %c0_79 = arith.constant 0 : index
    %c0_80 = arith.constant 0 : index
    %158 = vector.load %arg9[%c1_78, %c0_79, %c0_80] : memref<2x16x32xbf16, #tpu.memory_space<vmem>>, vector<1x16x32xbf16>
    %159 = vector.shape_cast %158 : vector<1x16x32xbf16> to vector<16x32xbf16>
    %cst_81 = arith.constant dense<0.000000e+00> : vector<8x32xf32>
    %160 = tpu.matmul %157, %159, %cst_81 {dimension_numbers = #tpu.dot_dimension_numbers<[1], [0], [0], [1], [0, 0, 1, 1], [], []>} : vector<8x16xbf16>, vector<16x32xbf16>, vector<8x32xf32> -> vector<8x32xf32>
    %161 = arith.addf %137, %160 : vector<8x32xf32>
    %162 = tpu.concatenate %114, %161 in 0 : vector<8x32xf32>, vector<8x32xf32> -> vector<16x32xf32>
    %163 = arith.addf %0, %162 : vector<16x32xf32>
    %c0_82 = arith.constant 0 : index
    %c0_83 = arith.constant 0 : index
    %164 = vector.load %arg10[%c0_82, %c0_83] : memref<1x32xf32, #tpu.memory_space<vmem>>, vector<1x32xf32>
    %165 = vector.broadcast %164 : vector<1x32xf32> to vector<16x32xf32>
    %166 = arith.addf %163, %165 : vector<16x32xf32>
    %c0_84 = arith.constant 0 : index
    %c0_85 = arith.constant 0 : index
    %167 = vector.load %arg11[%c0_84, %c0_85] : memref<1x32xf32, #tpu.memory_space<vmem>>, vector<1x32xf32>
    %c0_86 = arith.constant 0 : index
    %c0_87 = arith.constant 0 : index
    %168 = vector.load %arg12[%c0_86, %c0_87] : memref<1x32xf32, #tpu.memory_space<vmem>>, vector<1x32xf32>
    %cst_88 = arith.constant dense<0.000000e+00> : vector<16xf32>
    %169 = vector.multi_reduction <add>, %166, %cst_88 [1] : vector<16x32xf32> to vector<16xf32>
    %170 = vector.shape_cast %169 : vector<16xf32> to vector<16x1xf32>
    %cst_89 = arith.constant 3.200000e+01 : f32
    %171 = vector.broadcast %cst_89 : f32 to vector<16x1xf32>
    %172 = arith.divf %170, %171 : vector<16x1xf32>
    %173 = vector.broadcast %172 : vector<16x1xf32> to vector<16x32xf32>
    %174 = arith.subf %166, %173 : vector<16x32xf32>
    %175 = arith.mulf %174, %174 : vector<16x32xf32>
    %cst_90 = arith.constant dense<0.000000e+00> : vector<16xf32>
    %176 = vector.multi_reduction <add>, %175, %cst_90 [1] : vector<16x32xf32> to vector<16xf32>
    %177 = vector.shape_cast %176 : vector<16xf32> to vector<16x1xf32>
    %cst_91 = arith.constant 3.200000e+01 : f32
    %178 = vector.broadcast %cst_91 : f32 to vector<16x1xf32>
    %179 = arith.divf %177, %178 : vector<16x1xf32>
    %180 = vector.broadcast %172 : vector<16x1xf32> to vector<16x32xf32>
    %181 = arith.subf %166, %180 : vector<16x32xf32>
    %cst_92 = arith.constant 9.99999974E-6 : f32
    %182 = vector.broadcast %cst_92 : f32 to vector<16x1xf32>
    %183 = arith.addf %179, %182 : vector<16x1xf32>
    %184 = math.rsqrt %183 : vector<16x1xf32>
    %185 = vector.broadcast %184 : vector<16x1xf32> to vector<16x32xf32>
    %186 = arith.mulf %181, %185 : vector<16x32xf32>
    %187 = vector.broadcast %167 : vector<1x32xf32> to vector<16x32xf32>
    %188 = arith.mulf %186, %187 : vector<16x32xf32>
    %189 = vector.broadcast %168 : vector<1x32xf32> to vector<16x32xf32>
    %190 = arith.addf %188, %189 : vector<16x32xf32>
    %191 = arith.truncf %190 : vector<16x32xf32> to vector<16x32xbf16>
    %c0_93 = arith.constant 0 : index
    %c0_94 = arith.constant 0 : index
    %192 = vector.load %arg13[%c0_93, %c0_94] : memref<32x128xbf16, #tpu.memory_space<vmem>>, vector<32x128xbf16>
    %cst_95 = arith.constant dense<0.000000e+00> : vector<16x128xf32>
    %193 = tpu.matmul %191, %192, %cst_95 {dimension_numbers = #tpu.dot_dimension_numbers<[1], [0], [0], [1], [0, 0, 1, 1], [], []>} : vector<16x32xbf16>, vector<32x128xbf16>, vector<16x128xf32> -> vector<16x128xf32>
    %c0_96 = arith.constant 0 : index
    %c0_97 = arith.constant 0 : index
    %194 = vector.load %arg14[%c0_96, %c0_97] : memref<1x128xf32, #tpu.memory_space<vmem>>, vector<1x128xf32>
    %195 = vector.broadcast %194 : vector<1x128xf32> to vector<16x128xf32>
    %196 = arith.addf %193, %195 : vector<16x128xf32>
    %197 = arith.mulf %196, %196 : vector<16x128xf32>
    %198 = arith.mulf %196, %197 : vector<16x128xf32>
    %cst_98 = arith.constant 4.471500e-02 : f32
    %199 = vector.broadcast %cst_98 : f32 to vector<16x128xf32>
    %200 = arith.mulf %199, %198 : vector<16x128xf32>
    %201 = arith.addf %196, %200 : vector<16x128xf32>
    %cst_99 = arith.constant 0.797884583 : f32
    %202 = vector.broadcast %cst_99 : f32 to vector<16x128xf32>
    %203 = arith.mulf %202, %201 : vector<16x128xf32>
    %204 = math.tanh %203 : vector<16x128xf32>
    %cst_100 = arith.constant 1.000000e+00 : f32
    %205 = vector.broadcast %cst_100 : f32 to vector<16x128xf32>
    %206 = arith.addf %205, %204 : vector<16x128xf32>
    %cst_101 = arith.constant 5.000000e-01 : f32
    %207 = vector.broadcast %cst_101 : f32 to vector<16x128xf32>
    %208 = arith.mulf %207, %206 : vector<16x128xf32>
    %209 = arith.mulf %196, %208 : vector<16x128xf32>
    %210 = arith.truncf %209 : vector<16x128xf32> to vector<16x128xbf16>
    %c0_102 = arith.constant 0 : index
    %c0_103 = arith.constant 0 : index
    %211 = vector.load %arg15[%c0_102, %c0_103] : memref<128x32xbf16, #tpu.memory_space<vmem>>, vector<128x32xbf16>
    %cst_104 = arith.constant dense<0.000000e+00> : vector<16x32xf32>
    %212 = tpu.matmul %210, %211, %cst_104 {dimension_numbers = #tpu.dot_dimension_numbers<[1], [0], [0], [1], [0, 0, 1, 1], [], []>} : vector<16x128xbf16>, vector<128x32xbf16>, vector<16x32xf32> -> vector<16x32xf32>
    %c0_105 = arith.constant 0 : index
    %c0_106 = arith.constant 0 : index
    %213 = vector.load %arg16[%c0_105, %c0_106] : memref<1x32xf32, #tpu.memory_space<vmem>>, vector<1x32xf32>
    %214 = vector.broadcast %213 : vector<1x32xf32> to vector<16x32xf32>
    %215 = arith.addf %212, %214 : vector<16x32xf32>
    %216 = arith.addf %166, %215 : vector<16x32xf32>
    %c0_107 = arith.constant 0 : index
    %c0_108 = arith.constant 0 : index
    %217 = vector.load %arg17[%c0_107, %c0_108] : memref<16x32xf32, #tpu.memory_space<vmem>>, vector<16x32xf32>
    tpu.vector_store %arg17[%c0_107, %c0_108], %216 {strides = array<i32>} : memref<16x32xf32, #tpu.memory_space<vmem>>, vector<16x32xf32>,
    return
  }
}

</mosaic_0001>

<bundles_post_ra>
// kernel: transformer_block.1
= control target key start
LH: loop header
LB: loop body
LE: loop exit
PB: predicated region body
PF: predicated region fallthrough
CT: control target
= control target key end

     0   :  { %s2179_s0 = inlined_call_operand.vmem [shape: f32[16,32], index: 0, kind: input, shape index: {}]   ;;  %s2180_s1 = inlined_call_operand.vmem [shape: f32[1,32], index: 1, kind: input, shape index: {}]   ;;  %s2181_s2 = inlined_call_operand.vmem [shape: f32[1,32], index: 2, kind: input, shape index: {}]   ;;  %s2182_s3 = inlined_call_operand.vmem [shape: bf16[2,32,16], index: 3, kind: input, shape index: {}]   ;;  %s2183_s4 = inlined_call_operand.vmem [shape: f32[2,1,16], index: 4, kind: input, shape index: {}]   ;;  %s2184_s5 = inlined_call_operand.vmem [shape: bf16[2,32,16], index: 5, kind: input, shape index: {}]   ;;  %s2185_s6 = inlined_call_operand.vmem [shape: f32[2,1,16], index: 6, kind: input, shape index: {}]   ;;  %s2186_s7 = inlined_call_operand.vmem [shape: bf16[2,32,16], index: 7, kind: input, shape index: {}]   ;;  %s2187_s8 = inlined_call_operand.vmem [shape: f32[2,1,16], index: 8, kind: input, shape index: {}]   ;;  %s2188_s9 = inlined_call_operand.vmem [shape: bf16[2,16,32], index: 9, kind: input, shape index: {}]   ;;  %s2189_s10 = inlined_call_operand.vmem [shape: f32[1,32], index: 10, kind: input, shape index: {}]   ;;  %s2190_s11 = inlined_call_operand.vmem [shape: f32[1,32], index: 11, kind: input, shape index: {}]   ;;  %s2191_s12 = inlined_call_operand.vmem [shape: f32[1,32], index: 12, kind: input, shape index: {}]   ;;  %s2192_s13 = inlined_call_operand.vmem [shape: bf16[32,128], index: 13, kind: input, shape index: {}]   ;;  %s2193_s14 = inlined_call_operand.vmem [shape: f32[1,128], index: 14, kind: input, shape index: {}]   ;;  %s2194_s15 = inlined_call_operand.vmem [shape: bf16[128,32], index: 15, kind: input, shape index: {}]   ;;  %s2195_s16 = inlined_call_operand.vmem [shape: f32[1,32], index: 16, kind: input, shape index: {}]   ;;  %s2196_s17 = inlined_call_operand.hbm [shape: f32[16,32], index: 17, kind: output, shape index: {}]  }
   0x1   :  { %2198 = sst [smem:[#allocation5_spill]] %s2179_s0 }
   0x2   :  { %2199 = sst [smem:[#allocation6_spill]] %s2180_s1 }
   0x3   :  { %s2200_s26 = sld [smem:[#allocation5_spill]]  ;;  %vm62_vm0 = vcmask 261120  }
   0x9   :  { %v1874_v0 = vld [vmem:[%s2200_s26] sm:$0xff]  ;;  %v1879_v1 = vld [vmem:[%s2200_s26 + $0x8] sm:$0xff] }
   0xa   :  { %v63_v2 = vsel %vm62_vm0, %v1874_v0, 0.0  ;;  %v66_v3 = vsel %vm62_vm0, %v1879_v1, 0.0 }
   0xb   :  { %64 = vadd.xlane.f32.xlu0 %v63_v2 }
   0xf   :  { %67 = vadd.xlane.f32.xlu0 %v66_v3 }
  0x10   :  { %22 = vsyncpa [#allocation3], 0  ;;  %v1698_v14 = vld [vmem:[%s2182_s3] sm:$0xff]   ;;  %v1699_v15 = vld [vmem:[%s2182_s3 + $0x10] sm:$0xff]   ;;  %v1776_v16 = vmov 0.0   ;;  %vm1777_vm1 = vmmov 0  }
  0x11   :  { %1545 = vmatprep.subr.bf16.mxu0 %v1776_v16  ;;  %1569 = vmatprep.subr.bf16.mxu1 %v1776_v16  ;;  %v1700_v17 = vld [vmem:[%s2182_s3 + $0x8] sm:$0xff]   ;;  %v1701_v18 = vld [vmem:[%s2182_s3 + $0x18] sm:$0xff]   ;;  %s2201_s23 = sld [smem:[#allocation6_spill]]  ;;  %v1415_v31 = vld [vmem:[%s2181_s2] ss:$0 sm:$0xff]  ;;  %vm503_vm2 = vcmask 130048  }
  0x12   :  { %1546 = vmatpush3.bf16.msra.mxu0 %v1698_v14  ;;  %1570 = vmatpush3.bf16.msra.mxu1 %v1699_v15  ;;  %v1702_v35 = vld [vmem:[%s2184_s5] sm:$0xff]   ;;  %v1703_v36 = vld [vmem:[%s2186_s7 + $0x10] sm:$0xff]   ;;  %v1704_v38 = vld [vmem:[%s2184_s5 + $0x8] sm:$0xff]   ;;  %vm566_vm3 = vcmask 1043456   ;;  %vm550_vm4 = vcmask 64512  }
  0x13   :  { %1547 = vmatprep.subr.bf16.mxu0 %v1776_v16  ;;  %1571 = vmatprep.subr.bf16.mxu1 %v1776_v16  ;;  %v1705_v39 = vld [vmem:[%s2186_s7 + $0x18] sm:$0xff]   ;;  %v1706_v40 = vld [vmem:[%s2186_s7] sm:$0xff]   ;;  %v1707_v41 = vld [vmem:[%s2186_s7 + $0x8] sm:$0xff]  }
  0x14   :  { %1549 = vmatprep.mubr.msk.bf16.mxu0 %vm1777_vm1, %v1776_v16  ;;  %1573 = vmatprep.mubr.msk.bf16.mxu1 %vm1777_vm1, %v1776_v16  ;;  %v1708_v42 = vld [vmem:[%s2184_s5 + $0x10] sm:$0xff]   ;;  %v1709_v43 = vld [vmem:[%s2184_s5 + $0x18] sm:$0xff]   ;;  %v1416_v48 = vld [vmem:[%s2183_s4] ss:$0 sm:$0xff] }
  0x15   :  { %v1433_v49 = vld [vmem:[%s2183_s4 + $0x1] ss:$0 sm:$0xff]  ;;  %v1420_v56 = vld [vmem:[%s2185_s6] ss:$0 sm:$0xff] }
  0x16   :  { %1548 = vmatpush3.bf16.msra.mxu0 %v1700_v17  ;;  %1572 = vmatpush3.bf16.msra.mxu1 %v1701_v18  ;;  %v1451_v57 = vld [vmem:[%s2187_s8 + $0x1] ss:$0 sm:$0xff] }
  0x17   :  { %1553 = vmatprep.subr.bf16.mxu0 %v1776_v16  ;;  %1585 = vmatprep.subr.bf16.mxu1 %v1776_v16  ;;  %v1414_v27 = vld [vmem:[%s2201_s23] ss:$0 sm:$0xff]  ;;  %s1778_s23 = smov [#allocation2]  }
  0x98   :  { %v65_v4 = vpop.xlane.xlu0 %64 }
  0x99   :  { %v70_v5 = vmul.f32 0.03125, %v65_v4 }
  0x9b   :  { %v72_v6 = vsub.f32 %v1874_v0, %v70_v5 }
  0x9c   :  { %v68_v7 = vpop.xlane.xlu0 %67 }
  0x9d   :  { %v71_v8 = vmul.f32 0.03125, %v68_v7  ;;  %v74_v9 = vmul.f32 %v72_v6, %v72_v6 }
  0x9f   :  { %v73_v10 = vsub.f32 %v1879_v1, %v71_v8  ;;  %v76_v11 = vsel %vm62_vm0, %v74_v9, 0.0 }
  0xa0   :  { %77 = vadd.xlane.f32.xlu1 %v76_v11 }
  0xa1   :  { %v75_v12 = vmul.f32 %v73_v10, %v73_v10 }
  0xa3   :  { %v79_v13 = vsel %vm62_vm0, %v75_v12, 0.0 }
  0xa4   :  { %80 = vadd.xlane.f32.xlu1 %v79_v13  ;;  %v1424_v13 = vld [vmem:[%s2187_s8] ss:$0 sm:$0xff] }
 0x12d   :  { %v78_v19 = vpop.xlane.xlu1 %77 }
 0x12e   :  { %v82_v20 = vmul.f32 0.03125, %v78_v19 }
 0x130   :  { %v84_v21 = vadd.f32 1e-05, %v82_v20 }
 0x131   :  { %v81_v22 = vpop.xlane.xlu1 %80 }
 0x132   :  { %1724 = vrsqrt.f32 %v84_v21  ;;  %v83_v23 = vmul.f32 0.03125, %v81_v22 }
 0x134   :  { %v85_v24 = vadd.f32 1e-05, %v83_v23 }
 0x136   :  { %1726 = vrsqrt.f32 %v85_v24 }
 0x13c   :  { %v1725_v25 = vpop.eup %1724 }
 0x13d   :  { %v88_v26 = vmul.f32 %v1725_v25, %v72_v6 }
 0x13f   :  { %v96_v29 = vmul.f32 %v1414_v27, %v88_v26 }
 0x140   :  { %v1727_v28 = vpop.eup %1726 }
 0x141   :  { %v89_v30 = vmul.f32 %v1727_v28, %v73_v10  ;;  %v104_v33 = vadd.f32 %v1415_v31, %v96_v29 }
 0x143   :  { %v97_v32 = vmul.f32 %v1414_v27, %v89_v30  ;;  %v1442_v27 = vld [vmem:[%s2185_s6 + $0x1] ss:$0 sm:$0xff] }
 0x145   :  { %v105_v34 = vadd.f32 %v1415_v31, %v97_v32 }
 0x147   :  { %v106_v37 = vpack.c.bf16 %v105_v34, %v104_v33 }
 0x149   :  { %1550 = vmatmul.mubr.msk.bf16.vlgmr.msra.gmra.mrb[0].mxu0 %vm62_vm0, %v106_v37  ;;  %1574 = vmatmul.mubr.msk.bf16.vlgmr.msra.gmra.mrb[0].mxu1 %vm62_vm0, %v106_v37 }
 0x14a   :  { %1554 = vmatpush3.bf16.msra.mxu0 %v1702_v35  ;;  %1586 = vmatpush3.bf16.msra.mxu1 %v1703_v36 }
 0x14b   :  { %1555 = vmatprep.subr.bf16.mxu0 %v1776_v16  ;;  %1587 = vmatprep.subr.bf16.mxu1 %v1776_v16 }
 0x14c   :  { %1557 = vmatprep.mubr.msk.bf16.mxu0 %vm1777_vm1, %v1776_v16  ;;  %1589 = vmatprep.mubr.msk.bf16.mxu1 %vm1777_vm1, %v1776_v16 }
 0x14e   :  { %1556 = vmatpush3.bf16.msra.mxu0 %v1704_v38  ;;  %1588 = vmatpush3.bf16.msra.mxu1 %v1705_v39 }
 0x14f   :  { %1561 = vmatprep.subr.bf16.mxu0 %v1776_v16  ;;  %1599 = vmatprep.subr.bf16.mxu1 %v1776_v16 }
 0x151   :  { %1558 = vmatmul.mubr.msk.bf16.vlgmr.msra.gmra.mrb[4].mxu0 %vm62_vm0, %v106_v37  ;;  %1590 = vmatmul.mubr.msk.bf16.vlgmr.msra.gmra.mrb[4].mxu1 %vm62_vm0, %v106_v37 }
 0x152   :  { %1562 = vmatpush3.bf16.msra.mxu0 %v1706_v40  ;;  %1565 = vmatprep.mubr.msk.bf16.mxu0 %vm1777_vm1, %v1776_v16 }
 0x153   :  { %1563 = vmatprep.subr.bf16.mxu0 %v1776_v16  ;;  %1601 = vmatprep.mubr.msk.bf16.mxu1 %vm1777_vm1, %v1776_v16 }
 0x156   :  { %1564 = vmatpush3.bf16.msra.mxu0 %v1707_v41 }
 0x157   :  { %1577 = vmatprep.subr.bf16.mxu0 %v1776_v16 }
 0x159   :  { %1566 = vmatmul.mubr.msk.bf16.vlgmr.msra.gmra.mrb[8].mxu0 %vm62_vm0, %v106_v37 }
 0x15a   :  { %1578 = vmatpush3.bf16.msra.mxu0 %v1708_v42  ;;  %1581 = vmatprep.mubr.msk.bf16.mxu0 %vm1777_vm1, %v1776_v16 }
 0x15b   :  { %1579 = vmatprep.subr.bf16.mxu0 %v1776_v16 }
 0x15e   :  { %1580 = vmatpush3.bf16.msra.mxu0 %v1709_v43 }
 0x15f   :  { %1593 = vmatprep.subr.bf16.mxu0 %v1776_v16 }
 0x161   :  { %1582 = vmatmul.mubr.msk.bf16.vlgmr.msra.gmra.mrb[12].mxu0 %vm62_vm0, %v106_v37 }
 0x162   :  { %1595 = vmatprep.mubr.msk.bf16.mxu0 %vm1777_vm1, %v1776_v16 }
 0x21c   :  { %v167_v44 = vpop.f32.mrb[0].mxu0  ;;  %v361_v45 = vpop.f32.mrb[0].mxu1 }
 0x21d   :  { %v1551_v46 = vpop.f32.mrb[1].mxu0  ;;  %v1575_v47 = vpop.f32.mrb[1].mxu1  ;;  %v168_v14 = vadd.f32 %v1416_v48, %v167_v44  ;;  %v362_v37 = vadd.f32 %v1433_v49, %v361_v45 }
 0x21e   :  { %v170_v50 = vpop.f32.mrb[2].mxu0  ;;  %v364_v51 = vpop.f32.mrb[2].mxu1 }
 0x21f   :  { %v1973_v52 = vadd.f32 %v1416_v48, %v170_v50  ;;  %v1975_v53 = vadd.f32 %v1433_v49, %v364_v51  ;;  %v1552_v54 = vpop.f32.mrb[3].mxu0  ;;  %v1576_v55 = vpop.f32.mrb[3].mxu1  ;;  %v500_v21 = vpack.c.bf16 %v168_v14, %v168_v14  ;;  %v613_v38 = vpack.c.bf16 %v362_v37, %v362_v37 }
 0x224   :  { %v231_v58 = vpop.f32.mrb[4].mxu0  ;;  %v493_v59 = vpop.f32.mrb[4].mxu1 }
 0x225   :  { %v232_v60 = vadd.f32 %v1420_v56, %v231_v58  ;;  %v494_v61 = vadd.f32 %v1451_v57, %v493_v59  ;;  %v1559_v62 = vpop.f32.mrb[5].mxu0  ;;  %v1591_v63 = vpop.f32.mrb[5].mxu1 }
 0x226   :  { %v234_v2 = vpop.f32.mrb[6].mxu0  ;;  %v496_v3 = vpop.f32.mrb[6].mxu1 }
 0x227   :  { %v501_v4 = vpack.c.bf16 %v232_v60, %v232_v60  ;;  %v615_v5 = vpack.c.bf16 %v494_v61, %v494_v61  ;;  %v1983_v6 = vadd.f32 %v1420_v56, %v234_v2  ;;  %v497_v7 = vadd.f32 %v1451_v57, %v496_v3  ;;  %v1560_v8 = vpop.f32.mrb[7].mxu0  ;;  %v1592_v9 = vpop.f32.mrb[7].mxu1 }
 0x228   :  { %v1711_v9 = vld [vmem:[%s2188_s9 + $0x8] sm:$0xff]  }
 0x229   :  { %v508_v10 = vsel %vm503_vm2, %v501_v4, 0  ;;  %v1987_v11 = vsel %vm566_vm3, %v615_v5, 0  ;;  %v934_v12 = vpack.c.bf16 %v497_v7, %v497_v7  ;;  %v1710_v7 = vld [vmem:[%s2188_s9] sm:$0xff]  }
 0x22a   :  { %1594 = vmatpush3.bf16.xpose.msra.mxu0 %v508_v10 }
 0x22b   :  { %v1993_v15 = vsel %vm566_vm3, %v934_v12, 0  ;;  %1605 = vmatprep.subr.bf16.mxu0 %v1776_v16 }
 0x22c   :  { %v295_v17 = vpop.f32.mrb[8].mxu0 }
 0x22d   :  { %v296_v18 = vadd.f32 %v1424_v13, %v295_v17  ;;  %v1567_v19 = vpop.f32.mrb[9].mxu0  ;;  %v823_v17 = vpack.c.bf16 %v1983_v6, %v1983_v6  ;;  %v822_v6 = vpack.c.bf16 %v1973_v52, %v1973_v52 }
 0x22e   :  { %v298_v20 = vpop.f32.mrb[10].mxu0 }
 0x22f   :  { %v502_v22 = vpack.c.bf16 %v296_v18, %v296_v18  ;;  %v299_v23 = vadd.f32 %v1424_v13, %v298_v20  ;;  %v1568_v24 = vpop.f32.mrb[11].mxu0 }
 0x231   :  { %v568_v25 = vsel %vm566_vm3, %v502_v22, 0  ;;  %v824_v26 = vpack.c.bf16 %v299_v23, %v299_v23  ;;  %1596 = vmatmul.mubr.msk.bf16.vlgmr.msra.gmra.mrb[16].mxu0 %vm503_vm2, %v500_v21  ;;  %v829_v22 = vsel %vm503_vm2, %v823_v17, 0 }
 0x232   :  { %1600 = vmatpush3.bf16.msra.mxu1 %v568_v25  ;;  %1607 = vmatprep.mubr.msk.bf16.mxu0 %vm1777_vm1, %v1776_v16 }
 0x233   :  { %v2004_v28 = vsel %vm566_vm3, %v824_v26, 0  ;;  %1611 = vmatprep.subr.bf16.mxu1 %v1776_v16  ;;  %v932_v26 = vpack.c.bf16 %v1975_v53, %v1975_v53 }
 0x234   :  { %v427_v29 = vpop.f32.mrb[12].mxu0 }
 0x235   :  { %v428_v30 = vadd.f32 %v1442_v27, %v427_v29  ;;  %v1583_v31 = vpop.f32.mrb[13].mxu0 }
 0x236   :  { %v430_v32 = vpop.f32.mrb[14].mxu0 }
 0x237   :  { %v614_v33 = vpack.c.bf16 %v428_v30, %v428_v30  ;;  %v2007_v34 = vadd.f32 %v1442_v27, %v430_v32  ;;  %v1584_v35 = vpop.f32.mrb[15].mxu0 }
 0x239   :  { %v620_v36 = vsel %vm503_vm2, %v614_v33, 0  ;;  %v933_v24 = vpack.c.bf16 %v2007_v34, %v2007_v34 }
 0x23a   :  { %1606 = vmatpush3.bf16.xpose.msra.mxu0 %v620_v36 }
 0x23b   :  { %1617 = vmatprep.subr.bf16.mxu0 %v1776_v16  ;;  %v939_v25 = vsel %vm503_vm2, %v933_v24, 0 }
 0x241   :  { %1608 = vmatmul.mubr.msk.bf16.vlgmr.msra.gmra.mrb[20].mxu0 %vm503_vm2, %v613_v38 }
 0x242   :  { %1619 = vmatprep.mubr.msk.bf16.mxu0 %vm1777_vm1, %v1776_v16  ;;  %1618 = vmatpush3.bf16.msra.mxu0 %v1711_v9 }
 0x243   :  { %1629 = vmatprep.subr.bf16.mxu0 %v1776_v16 }
 0x304   :  { %v544_v39 = vpop.f32.mrb[16].mxu0 }
 0x305   :  { %v1597_v40 = vpop.f32.mrb[17].mxu0  ;;  %v551_v41 = vsel %vm550_vm4, %v544_v39, -inf }
 0x306   :  { %552 = vmax.xlane.f32.xlu0 %v551_v41  ;;  %v547_v42 = vpop.f32.mrb[18].mxu0 }
 0x307   :  { %v1598_v43 = vpop.f32.mrb[19].mxu0 }
 0x314   :  { %v656_v44 = vpop.f32.mrb[20].mxu0 }
 0x315   :  { %v1609_v46 = vpop.f32.mrb[21].mxu0  ;;  %v662_v45 = vsel %vm550_vm4, %v656_v44, -inf }
 0x316   :  { %663 = vmax.xlane.f32.xlu1 %v662_v45  ;;  %v659_v47 = vpop.f32.mrb[22].mxu0 }
 0x317   :  { %v1610_v48 = vpop.f32.mrb[23].mxu0 }
 0x393   :  { %v553_v49 = vpop.xlane.xlu0 %552 }
 0x394   :  { %v554_v50 = vsub.f32 %v544_v39, %v553_v49 }
 0x396   :  { %v555_v51 = vmul.f32 1.442695, %v554_v50 }
 0x398   :  { %1728 = vpow2.f32 %v555_v51  ;;  %v2066_v51 = vld [vmem:[%s2189_s10] ss:$0 sm:$0xff] }
 0x3a2   :  { %v1729_v54 = vpop.eup %1728 }
 0x3a3   :  { %v664_v55 = vpop.xlane.xlu1 %663  ;;  %v557_v56 = vsel %vm550_vm4, %v1729_v54, 0.0 }
 0x3a4   :  { %v665_v57 = vsub.f32 %v656_v44, %v664_v55  ;;  %558 = vadd.xlane.f32.xlu0 %v557_v56 }
 0x3a6   :  { %v666_v58 = vmul.f32 1.442695, %v665_v57 }
 0x3a8   :  { %1730 = vpow2.f32 %v666_v58 }
 0x3b2   :  { %v1731_v59 = vpop.eup %1730 }
 0x3b3   :  { %v668_v60 = vsel %vm550_vm4, %v1731_v59, 0.0 }
 0x3b4   :  { %669 = vadd.xlane.f32.xlu1 %v668_v60 }
 0x431   :  { %v559_v61 = vpop.xlane.xlu0 %558 }
 0x432   :  { %1732 = vrcp.f32 %v559_v61 }
 0x43c   :  { %v1733_v62 = vpop.eup %1732 }
 0x43d   :  { %v561_v63 = vmul.f32 %v1733_v62, %v1729_v54 }
 0x43f   :  { %v562_v2 = vpack.c.bf16 %v561_v63, %v561_v63 }
 0x441   :  { %1602 = vmatmul.mubr.msk.bf16.vlgmr.msra.gmra.mrb[8].mxu1 %vm550_vm4, %v562_v2  ;;  %v670_v3 = vpop.xlane.xlu1 %669 }
 0x442   :  { %1612 = vmatpush3.bf16.msra.mxu1 %v1987_v11  ;;  %1734 = vrcp.f32 %v670_v3  ;;  %1613 = vmatprep.mubr.msk.bf16.mxu1 %vm1777_vm1, %v1776_v16 }
 0x443   :  { %1623 = vmatprep.subr.bf16.mxu1 %v1776_v16 }
 0x44c   :  { %v1735_v4 = vpop.eup %1734 }
 0x44d   :  { %v672_v5 = vmul.f32 %v1735_v4, %v1731_v59 }
 0x44f   :  { %v673_v8 = vpack.c.bf16 %v672_v5, %v672_v5 }
 0x451   :  { %1614 = vmatmul.mubr.msk.bf16.vlgmr.msra.gmra.mrb[12].mxu1 %vm550_vm4, %v673_v8 }
 0x452   :  { %1624 = vmatpush3.bf16.msra.mxu1 %v1710_v7  ;;  %1625 = vmatprep.mubr.msk.bf16.mxu1 %vm1777_vm1, %v1776_v16 }
 0x453   :  { %1635 = vmatprep.subr.bf16.mxu1 %v1776_v16 }
 0x514   :  { %v604_v10 = vpop.f32.mrb[8].mxu1 }
 0x515   :  { %v610_v11 = vpack.c.bf16 %v604_v10, %v604_v10  ;;  %v1603_v12 = vpop.f32.mrb[9].mxu1 }
 0x516   :  { %v607_v13 = vpop.f32.mrb[10].mxu1 }
 0x517   :  { %v1604_v14 = vpop.f32.mrb[11].mxu1  ;;  %1626 = vmatmul.mubr.msk.bf16.vlgmr.msra.gmra.mrb[16].mxu1 %vm503_vm2, %v610_v11  ;;  %v1712_v11 = vld [vmem:[%s2188_s9] sm:$0xff]  }
 0x518   :  { %1636 = vmatpush3.bf16.msra.mxu1 %v2004_v28  ;;  %1637 = vmatprep.mubr.msk.bf16.mxu1 %vm1777_vm1, %v1776_v16 }
 0x519   :  { %1647 = vmatprep.subr.bf16.mxu1 %v1776_v16 }
 0x524   :  { %v714_v18 = vpop.f32.mrb[12].mxu1 }
 0x525   :  { %v720_v19 = vpack.c.bf16 %v714_v18, %v714_v18  ;;  %v1615_v20 = vpop.f32.mrb[13].mxu1 }
 0x526   :  { %v717_v21 = vpop.f32.mrb[14].mxu1 }
 0x527   :  { %v1616_v23 = vpop.f32.mrb[15].mxu1  ;;  %1620 = vmatmul.mubr.msk.bf16.vlgmr.msra.gmra.mrb[24].mxu0 %vm503_vm2, %v720_v19 }
 0x528   :  { %1630 = vmatpush3.bf16.xpose.msra.mxu0 %v829_v22  ;;  %1631 = vmatprep.mubr.msk.bf16.mxu0 %vm1777_vm1, %v1776_v16 }
 0x529   :  { %1641 = vmatprep.subr.bf16.mxu0 %v1776_v16 }
 0x52f   :  { %1632 = vmatmul.mubr.msk.bf16.vlgmr.msra.gmra.mrb[28].mxu0 %vm503_vm2, %v822_v6 }
 0x530   :  { %1642 = vmatpush3.bf16.xpose.msra.mxu0 %v939_v25  ;;  %1643 = vmatprep.mubr.msk.bf16.mxu0 %vm1777_vm1, %v1776_v16 }
 0x531   :  { %1653 = vmatprep.subr.bf16.mxu0 %v1776_v16 }
 0x537   :  { %1644 = vmatmul.mubr.msk.bf16.vlgmr.msra.gmra.mrb[32].mxu0 %vm503_vm2, %v932_v26 }
 0x538   :  { %1655 = vmatprep.mubr.msk.bf16.mxu0 %vm1777_vm1, %v1776_v16 }
 0x5ea   :  { %v816_v27 = vpop.f32.mrb[16].mxu1 }
 0x5eb   :  { %v1627_v52 = vpop.f32.mrb[17].mxu1 }
 0x5ec   :  { %v819_v28 = vpop.f32.mrb[18].mxu1 }
 0x5ed   :  { %v1628_v29 = vpop.f32.mrb[19].mxu1 }
 0x5fa   :  { %v767_v30 = vpop.f32.mrb[24].mxu0 }
 0x5fb   :  { %v817_v31 = vadd.f32 %v816_v27, %v767_v30  ;;  %v1621_v32 = vpop.f32.mrb[25].mxu0 }
 0x5fc   :  { %v770_v33 = vpop.f32.mrb[26].mxu0 }
 0x5fd   :  { %v1622_v34 = vpop.f32.mrb[27].mxu0  ;;  %v1140_v50 = vadd.f32 %v817_v31, %v1874_v0 }
 0x5ff   :  { %v2069_v55 = vadd.f32 %v2066_v51, %v1140_v50 }
 0x601   :  { %v1153_v57 = vsel %vm62_vm0, %v2069_v55, 0.0 }
 0x602   :  { %v865_v35 = vpop.f32.mrb[28].mxu0 }
 0x603   :  { %v1633_v36 = vpop.f32.mrb[29].mxu0  ;;  %v871_v37 = vsel %vm550_vm4, %v865_v35, -inf }
 0x604   :  { %872 = vmax.xlane.f32.xlu0 %v871_v37  ;;  %v868_v53 = vpop.f32.mrb[30].mxu0 }
 0x605   :  { %v1634_v38 = vpop.f32.mrb[31].mxu0 }
 0x606   :  { %v1715_v38 = vld [vmem:[%s2192_s13 + $0x8] sm:$0xff]  }
 0x60a   :  { %v975_v39 = vpop.f32.mrb[32].mxu0 }
 0x60b   :  { %v1645_v40 = vpop.f32.mrb[33].mxu0  ;;  %v981_v41 = vsel %vm550_vm4, %v975_v39, -inf }
 0x60c   :  { %982 = vmax.xlane.f32.xlu1 %v981_v41  ;;  %v978_v42 = vpop.f32.mrb[34].mxu0 }
 0x60d   :  { %v1646_v43 = vpop.f32.mrb[35].mxu0 }
 0x691   :  { %v873_v44 = vpop.xlane.xlu0 %872 }
 0x692   :  { %v874_v46 = vsub.f32 %v865_v35, %v873_v44 }
 0x694   :  { %v875_v45 = vmul.f32 1.442695, %v874_v46 }
 0x696   :  { %1736 = vpow2.f32 %v875_v45 }
 0x699   :  { %v983_v47 = vpop.xlane.xlu1 %982 }
 0x69a   :  { %v984_v48 = vsub.f32 %v975_v39, %v983_v47  ;;  %v1476_v47 = vld [vmem:[%s2190_s11] ss:$0 sm:$0xff] }
 0x69c   :  { %v985_v49 = vmul.f32 1.442695, %v984_v48 }
 0x69e   :  { %1738 = vpow2.f32 %v985_v49 }
 0x6a0   :  { %v1737_v54 = vpop.eup %1736 }
 0x6a1   :  { %v877_v56 = vsel %vm550_vm4, %v1737_v54, 0.0 }
 0x6a2   :  { %878 = vadd.xlane.f32.xlu0 %v877_v56 }
 0x6a6   :  { %1154 = vadd.xlane.f32.xlu0 %v1153_v57 }
 0x6a8   :  { %v1739_v58 = vpop.eup %1738 }
 0x6a9   :  { %v987_v0 = vsel %vm550_vm4, %v1739_v58, 0.0 }
 0x6aa   :  { %988 = vadd.xlane.f32.xlu1 %v987_v0  ;;  %v1716_v0 = vld [vmem:[%s2194_s15] sm:$0xff]  }
 0x72f   :  { %v879_v59 = vpop.xlane.xlu0 %878 }
 0x730   :  { %1740 = vrcp.f32 %v879_v59  ;;  %v1717_v59 = vld [vmem:[%s2194_s15 + $0x8] sm:$0xff]  }
 0x733   :  { %v1155_v60 = vpop.xlane.xlu0 %1154 }
 0x734   :  { %v1159_v61 = vmul.f32 0.03125, %v1155_v60  ;;  %v1718_v60 = vld [vmem:[%s2194_s15 + $0x10] sm:$0xff]  }
 0x736   :  { %v2076_v62 = vsub.f32 %v2069_v55, %v1159_v61  ;;  %v1719_v61 = vld [vmem:[%s2194_s15 + $0x18] sm:$0xff]  }
 0x737   :  { %v989_v63 = vpop.xlane.xlu1 %988 }
 0x738   :  { %1742 = vrcp.f32 %v989_v63  ;;  %v1163_v2 = vmul.f32 %v2076_v62, %v2076_v62  ;;  %v1721_v63 = vld [vmem:[%s2194_s15 + $0x28] sm:$0xff]  }
 0x73a   :  { %v1741_v3 = vpop.eup %1740  ;;  %v1165_v4 = vsel %vm62_vm0, %v1163_v2, 0.0  ;;  %v1722_v2 = vld [vmem:[%s2194_s15 + $0x30] sm:$0xff]  }
 0x73b   :  { %v881_v5 = vmul.f32 %v1741_v3, %v1737_v54  ;;  %1166 = vadd.xlane.f32.xlu0 %v1165_v4  ;;  %v1723_v3 = vld [vmem:[%s2194_s15 + $0x38] sm:$0xff]   ;;  %v1478_v4 = vld [vmem:[%s2193_s14] ss:$0 sm:$0xff] }
 0x73d   :  { %v882_v7 = vpack.c.bf16 %v881_v5, %v881_v5 }
 0x73f   :  { %1638 = vmatmul.mubr.msk.bf16.vlgmr.msra.gmra.mrb[20].mxu1 %vm550_vm4, %v882_v7 }
 0x740   :  { %1648 = vmatpush3.bf16.msra.mxu1 %v1993_v15  ;;  %1649 = vmatprep.mubr.msk.bf16.mxu1 %vm1777_vm1, %v1776_v16  ;;  %v1713_v15 = vld [vmem:[%s2188_s9 + $0x8] sm:$0xff]   ;;  %s1403_s9 = sshll.u32 %s1778_s23, 4  ;;  %s1404_s9 = int_to_ptr.vmem [resolvable:$true] %s1403_s9 }
 0x741   :  { %1659 = vmatprep.subr.bf16.mxu1 %v1776_v16  ;;  %1654 = vmatpush3.bf16.msra.mxu0 %v1713_v15  ;;  %s1752_s7 = scalar_lea.vmem %s1404_s9, 256  ;;  %p1757_p1 = scmp.lt.s32.totalorder %s1404_s9, %s1404_s9 }
 0x742   :  { %v1743_v8 = vpop.eup %1742  ;;  %1665 = vmatprep.subr.bf16.mxu0 %v1776_v16  ;;  %p1753_p0 = scmp.ne.s32.totalorder %s1404_s9, %s1752_s7  ;;  %p1758_p2 = scmp.lt.s32.totalorder %s1752_s7, %s1752_s7 }
 0x743   :  { %v991_v9 = vmul.f32 %v1743_v8, %v1739_v58 }
 0x744   :  { %p1759_p3 = por %p1758_p2, %p1757_p1 }
 0x745   :  { %v992_v10 = vpack.c.bf16 %v991_v9, %v991_v9 }
 0x746   :  { %p1760_p4 = pnand %p1759_p3, %p1753_p0 }
 0x747   :  { %1650 = vmatmul.mubr.msk.bf16.vlgmr.msra.gmra.mrb[24].mxu1 %vm550_vm4, %v992_v10 }
 0x748   :  { %1661 = vmatprep.mubr.msk.bf16.mxu1 %vm1777_vm1, %v1776_v16  ;;  %1660 = vmatpush3.bf16.msra.mxu1 %v1712_v11 }
 0x749   :  { %1673 = vmatprep.subr.bf16.mxu1 %v1776_v16 }
 0x7c8   :  { %v1167_v39 = vpop.xlane.xlu0 %1166 }
 0x7c9   :  { %v1171_v40 = vmul.f32 0.03125, %v1167_v39 }
 0x7cb   :  { %v1173_v41 = vadd.f32 1e-05, %v1171_v40 }
 0x7cd   :  { %1744 = vrsqrt.f32 %v1173_v41 }
 0x7d7   :  { %v1745_v46 = vpop.eup %1744 }
 0x7d8   :  { %v1177_v45 = vmul.f32 %v1745_v46, %v2076_v62  ;;  %v1720_v62 = vld [vmem:[%s2194_s15 + $0x20] sm:$0xff]  }
 0x7da   :  { %v1185_v49 = vmul.f32 %v1476_v47, %v1177_v45 }
 0x812   :  { %v923_v12 = vpop.f32.mrb[20].mxu1 }
 0x813   :  { %v929_v13 = vpack.c.bf16 %v923_v12, %v923_v12  ;;  %v1639_v14 = vpop.f32.mrb[21].mxu1 }
 0x814   :  { %v926_v17 = vpop.f32.mrb[22].mxu1 }
 0x815   :  { %v1640_v18 = vpop.f32.mrb[23].mxu1  ;;  %1662 = vmatmul.mubr.msk.bf16.vlgmr.msra.gmra.mrb[28].mxu1 %vm503_vm2, %v929_v13 }
 0x816   :  { %1689 = vmatprep.mubr.msk.bf16.mxu1 %vm1777_vm1, %v1776_v16  ;;  %1674 = vmatpush3.bf16.msra.mxu1 %v1716_v0 }
 0x817   :  { %1675 = vmatprep.subr.bf16.mxu1 %v1776_v16 }
 0x81a   :  { %v1033_v19 = vpop.f32.mrb[24].mxu1  ;;  %1676 = vmatpush3.bf16.msra.mxu1 %v1717_v59 }
 0x81b   :  { %v1039_v20 = vpack.c.bf16 %v1033_v19, %v1033_v19  ;;  %v1651_v21 = vpop.f32.mrb[25].mxu1  ;;  %1677 = vmatprep.subr.bf16.mxu1 %v1776_v16 }
 0x81c   :  { %v1036_v22 = vpop.f32.mrb[26].mxu1 }
 0x81d   :  { %v1652_v23 = vpop.f32.mrb[27].mxu1  ;;  %1656 = vmatmul.mubr.msk.bf16.vlgmr.msra.gmra.mrb[36].mxu0 %vm503_vm2, %v1039_v20 }
 0x81e   :  { %1669 = vmatprep.mubr.msk.bf16.mxu0 %vm1777_vm1, %v1776_v16  ;;  %1678 = vmatpush3.bf16.msra.mxu1 %v1718_v60 }
 0x81f   :  { %1679 = vmatprep.subr.bf16.mxu1 %v1776_v16 }
 0x822   :  { %1680 = vmatpush3.bf16.msra.mxu1 %v1719_v61 }
 0x823   :  { %1681 = vmatprep.subr.bf16.mxu1 %v1776_v16 }
 0x826   :  { %1682 = vmatpush3.bf16.msra.mxu1 %v1720_v62 }
 0x827   :  { %1683 = vmatprep.subr.bf16.mxu1 %v1776_v16 }
 0x82a   :  { %1684 = vmatpush3.bf16.msra.mxu1 %v1721_v63 }
 0x82b   :  { %1685 = vmatprep.subr.bf16.mxu1 %v1776_v16 }
 0x82e   :  { %1686 = vmatpush3.bf16.msra.mxu1 %v1722_v2 }
 0x82f   :  { %1687 = vmatprep.subr.bf16.mxu1 %v1776_v16 }
 0x832   :  { %1688 = vmatpush3.bf16.msra.mxu1 %v1723_v3 }
 0x8e8   :  { %v1134_v24 = vpop.f32.mrb[28].mxu1 }
 0x8e9   :  { %v1663_v6 = vpop.f32.mrb[29].mxu1 }
 0x8ea   :  { %v1137_v25 = vpop.f32.mrb[30].mxu1 }
 0x8eb   :  { %v1664_v26 = vpop.f32.mrb[31].mxu1 }
 0x8f0   :  { %v1085_v27 = vpop.f32.mrb[36].mxu0 }
 0x8f1   :  { %v1135_v52 = vadd.f32 %v1134_v24, %v1085_v27  ;;  %v1657_v28 = vpop.f32.mrb[37].mxu0 }
 0x8f2   :  { %v1088_v29 = vpop.f32.mrb[38].mxu0 }
 0x8f3   :  { %v1141_v30 = vadd.f32 %v1135_v52, %v1879_v1  ;;  %v1658_v31 = vpop.f32.mrb[39].mxu0  ;;  %v1714_v1 = vld [vmem:[%s2192_s13] sm:$0xff]  }
 0x8f4   :  { %1666 = vmatpush3.bf16.msra.mxu0 %v1714_v1  ;;  %v1482_v29 = vld [vmem:[%s2195_s16] ss:$0 sm:$0xff] }
 0x8f5   :  { %v2105_v32 = vadd.f32 %v2066_v51, %v1141_v30  ;;  %1667 = vmatprep.subr.bf16.mxu0 %v1776_v16  ;;  %v1477_v51 = vld [vmem:[%s2191_s12] ss:$0 sm:$0xff] }
 0x8f6   :  { %v1193_v56 = vadd.f32 %v1477_v51, %v1185_v49 }
 0x8f7   :  { %v1156_v33 = vsel %vm62_vm0, %v2105_v32, 0.0 }
 0x8f8   :  { %1157 = vadd.xlane.f32.xlu1 %v1156_v33  ;;  %1668 = vmatpush3.bf16.msra.mxu0 %v1715_v38 }
 0x985   :  { %v1158_v34 = vpop.xlane.xlu1 %1157 }
 0x986   :  { %v1160_v35 = vmul.f32 0.03125, %v1158_v34 }
 0x988   :  { %v1162_v36 = vsub.f32 %v2105_v32, %v1160_v35 }
 0x98a   :  { %v1164_v37 = vmul.f32 %v1162_v36, %v1162_v36 }
 0x98c   :  { %v1168_v53 = vsel %vm62_vm0, %v1164_v37, 0.0 }
 0x98d   :  { %1169 = vadd.xlane.f32.xlu1 %v1168_v53 }
 0xa1a   :  { %v1170_v42 = vpop.xlane.xlu1 %1169 }
 0xa1b   :  { %v1172_v43 = vmul.f32 0.03125, %v1170_v42 }
 0xa1d   :  { %v1174_v44 = vadd.f32 1e-05, %v1172_v43 }
 0xa1f   :  { %1746 = vrsqrt.f32 %v1174_v44 }
 0xa29   :  { %v1747_v48 = vpop.eup %1746 }
 0xa2a   :  { %v1178_v50 = vmul.f32 %v1747_v48, %v1162_v36 }
 0xa2c   :  { %v1186_v54 = vmul.f32 %v1476_v47, %v1178_v50 }
 0xa2e   :  { %v1194_v57 = vadd.f32 %v1477_v51, %v1186_v54 }
 0xa30   :  { %v1195_v58 = vpack.c.bf16 %v1194_v57, %v1193_v56 }
 0xa32   :  { %1670 = vmatmul.mubr.msk.bf16.vlgmr.msra.gmra.mrb[40].mxu0 %vm62_vm0, %v1195_v58 }
 0xb05   :  { %v1256_v5 = vpop.f32.mrb[40].mxu0 }
 0xb06   :  { %v1257_v7 = vadd.f32 %v1478_v4, %v1256_v5  ;;  %v1671_v8 = vpop.f32.mrb[41].mxu0 }
 0xb07   :  { %v1259_v9 = vpop.f32.mrb[42].mxu0 }
 0xb08   :  { %v1263_v10 = vmul.f32 %v1257_v7, %v1257_v7  ;;  %v1260_v11 = vadd.f32 %v1478_v4, %v1259_v9  ;;  %v1672_v15 = vpop.f32.mrb[43].mxu0 }
 0xb0a   :  { %v1265_v12 = vmul.f32 %v1263_v10, %v1257_v7  ;;  %v1264_v13 = vmul.f32 %v1260_v11, %v1260_v11 }
 0xb0c   :  { %v1267_v14 = vmul.f32 0.044715, %v1265_v12  ;;  %v1266_v16 = vmul.f32 %v1264_v13, %v1260_v11 }
 0xb0e   :  { %v1269_v17 = vadd.f32 %v1267_v14, %v1257_v7  ;;  %v1268_v18 = vmul.f32 0.044715, %v1266_v16 }
 0xb10   :  { %v1271_v19 = vmul.f32 0.7978846, %v1269_v17  ;;  %v1270_v20 = vadd.f32 %v1268_v18, %v1260_v11 }
 0xb12   :  { %1748 = vtanh.f32 %v1271_v19  ;;  %v1272_v21 = vmul.f32 0.7978846, %v1270_v20 }
 0xb14   :  { %1750 = vtanh.f32 %v1272_v21 }
 0xb1c   :  { %v1749_v22 = vpop.eup %1748 }
 0xb1d   :  { %v1275_v23 = vadd.f32 1.0, %v1749_v22 }
 0xb1e   :  { %v1751_v24 = vpop.eup %1750 }
 0xb1f   :  { %v1277_v6 = vmul.f32 0.5, %v1275_v23  ;;  %v1276_v25 = vadd.f32 1.0, %v1751_v24 }
 0xb21   :  { %v1278_v26 = vmul.f32 0.5, %v1276_v25  ;;  %v1279_v27 = vmul.f32 %v1277_v6, %v1257_v7 }
 0xb23   :  { %v1280_v52 = vmul.f32 %v1278_v26, %v1260_v11 }
 0xb25   :  { %v1281_v28 = vpack.c.bf16 %v1280_v52, %v1279_v27 }
 0xb27   :  { %1690 = vmatmul.mubr.bf16.vlgmr.msra.gmra.mrb[32].mxu1 %v1281_v28 }
 0xbfa   :  { %v1387_v30 = vpop.f32.mrb[32].mxu1 }
 0xbfb   :  { %v1388_v31 = vadd.f32 %v1482_v29, %v1387_v30  ;;  %v1691_v33 = vpop.f32.mrb[33].mxu1 }
 0xbfc   :  { %v1390_v34 = vpop.f32.mrb[34].mxu1 }
 0xbfd   :  { %v1394_v35 = vadd.f32 %v1388_v31, %v2069_v55  ;;  %v1391_v36 = vadd.f32 %v1482_v29, %v1390_v34  ;;  %v1692_v37 = vpop.f32.mrb[35].mxu1 }
 0xbff   :  { %1396 = vst.msk [vmem:[#allocation2] sm:$0xff] %vm62_vm0, %v1394_v35  ;;  %v1395_v53 = vadd.f32 %v1391_v36, %v2105_v32 }
 0xc01   :  { %1397 = vst.msk [vmem:[#allocation2 + $0x8] sm:$0xff] %vm62_vm0, %v1395_v53 }
 0xc02   :  { %1763 = shalt.err (!%p1760_p4)
}
 0xc03   :  { %s1764_s25 = scalar_lea.hbm %s2196_s17, 256 }
 0xc04   :  { %p1765_p5 = scmp.ne.s32.totalorder %s2196_s17, %s1764_s25  ;;  %p1768_p6 = scmp.lt.u32.totalorder %s1764_s25, %s2196_s17 }
 0xc06   :  { %p1770_p7 = pnand %p1768_p6, %p1765_p5 }
 0xc08   :  { %1773 = shalt.err (!%p1770_p7)
}
 0xc09   :  { %s1779_s28 = smov 128   ;;  %s1780_s29 = smov 8  }
 0xc0a   :  { %1409 = dma.vmem_to_hbm [thread:$0]  %s1404_s9, 256, %s2196_s17, [#allocation3], %s1779_s28, %s1779_s28, %s1780_s29  }
 0xc0b   :  { %1774 = dma.done.wait [#allocation3], 256  }
 0xc0c   :  { %1775 = vsyncadd [#allocation3], 4294967040 }
 0xc0d   :  { %1413 = vsyncpa [#allocation3], 1 }

</bundles_post_ra>
